<compile_context>
chip_gen: v7x
topology: tpu7x:2x2x1
jax: 0.10.0
libtpu: 0.0.40
codegen_flags: <defaults>
</compile_context>

<pallas_src>
import jax
import jax.numpy as jnp
from jax.experimental import pallas as pl
from jax.experimental.pallas import tpu as pltpu

LANES = 128      # vreg lane width
ROW_ALIGN = 8    # f32 sublane count per vreg


def perceptron_kernel(params_ref, x_ref, o_ref):
    # params_ref : SMEM f32[13] = [w1 (2x3 row-major, [in,out]), b1 (3), w2 (3), b2 (1)]
    # x_ref      : VMEM f32[2, TM, 128]   (feature, sample-row, sample-lane)
    # o_ref      : VMEM f32[TM, 128]
    w100 = params_ref[0]
    w101 = params_ref[1]
    w102 = params_ref[2]
    w110 = params_ref[3]
    w111 = params_ref[4]
    w112 = params_ref[5]
    b10 = params_ref[6]
    b11 = params_ref[7]
    b12 = params_ref[8]
    w20 = params_ref[9]
    w21 = params_ref[10]
    w22 = params_ref[11]
    b2 = params_ref[12]

    x0 = x_ref[0]  # [TM, 128] f32, sublane+lane dense
    x1 = x_ref[1]

    # Hidden layer + ReLU (pure VPU multiply-adds).
    h0 = jnp.maximum(x0 * w100 + x1 * w110 + b10, 0.0)
    h1 = jnp.maximum(x0 * w101 + x1 * w111 + b11, 0.0)
    h2 = jnp.maximum(x0 * w102 + x1 * w112 + b12, 0.0)

    # Output layer.
    o_ref[...] = h0 * w20 + h1 * w21 + h2 * w22 + b2


def perceptron_forward(x, w1, b1, w2, b2, *, target_tile_samples=512 * 1024):
    """x: [N, 2] f32; w1: [2, 3]; b1: [3]; w2: [3, 1]; b2: [1] -> [N, 1] f32."""
    n = x.shape[0]

    # ---- Sample-axis tiling: samples live on a dense (rows, 128) slab. ----
    rows_min = pl.cdiv(n, LANES)
    rows_min = pl.cdiv(rows_min, ROW_ALIGN) * ROW_ALIGN

    target_tile_rows = max(ROW_ALIGN, target_tile_samples // LANES)
    steps = max(1, pl.cdiv(rows_min, target_tile_rows))
    # v7x megacore: keep >= 2 grid steps whenever there is enough data so the
    # parallel sample axis can be split across both TensorCores.
    if steps < 2 and rows_min >= 2 * ROW_ALIGN:
        steps = 2
    tile_rows = pl.cdiv(pl.cdiv(rows_min, steps), ROW_ALIGN) * ROW_ALIGN
    rows = steps * tile_rows
    n_pad = rows * LANES

    # Pack all 13 parameters into one SMEM-resident scalar array.
    params = jnp.concatenate(
        [w1.reshape(-1), b1.reshape(-1), w2.reshape(-1), b2.reshape(-1)]
    ).astype(jnp.float32)

    # Feature-major, sublane+lane-dense layout: [2, rows, 128].
    # TODO(synk): accept x feature-major ([2, N]) from the producer to remove
    # this transpose (it costs one extra read+write of x in HBM).
    x_pad = jnp.pad(x.astype(jnp.float32), ((0, n_pad - n), (0, 0)))
    x_t = x_pad.T.reshape(2, rows, LANES)

    out = pl.pallas_call(
        perceptron_kernel,
        out_shape=jax.ShapeDtypeStruct((rows, LANES), jnp.float32),
        grid=(steps,),
        in_specs=[
            pl.BlockSpec(memory_space=pltpu.MemorySpace.SMEM),          # params (resident)
            pl.BlockSpec((2, tile_rows, LANES), lambda i: (0, i, 0)),   # x tile
        ],
        out_specs=pl.BlockSpec((tile_rows, LANES), lambda i: (i, 0)),
        compiler_params=pltpu.CompilerParams(
            dimension_semantics=("parallel",),
            vmem_limit_bytes=32 * 1024 * 1024,
        ),
    )(params, x_t)

    # Padded tail samples compute relu(b1)@w2 + b2 garbage; sliced off here.
    return out.reshape(-1)[:n].reshape(n, 1)


def reference_forward(x, w1, b1, w2, b2):
    h = jnp.maximum(x @ w1 + b1, 0.0)
    return h @ w2 + b2


if __name__ == "__main__":
    key = jax.random.PRNGKey(0)
    kx, k1, k2, k3, k4 = jax.random.split(key, 5)

    # Parameters stored as [in, out] for the x @ W convention
    # (PyTorch nn.Linear keeps [out, in]; transposing is wrapper glue).
    w1 = jax.random.uniform(k1, (2, 3), jnp.float32, minval=-0.7, maxval=0.7)
    b1 = jax.random.uniform(k2, (3,), jnp.float32, minval=-0.7, maxval=0.7)
    w2 = jax.random.uniform(k3, (3, 1), jnp.float32, minval=-0.57, maxval=0.57)
    b2 = jax.random.uniform(k4, (1,), jnp.float32, minval=-0.57, maxval=0.57)

    # Small batch of 8 samples with 2 features (like the CSV's x1, x2).
    N = 8
    x = jax.random.normal(kx, (N, 2), dtype=jnp.float32)
    out = jax.block_until_ready(perceptron_forward(x, w1, b1, w2, b2))
    ref = reference_forward(x, w1, b1, w2, b2)
    assert out.shape == (N, 1), out.shape
    assert jnp.allclose(out, ref, atol=1e-5, rtol=1e-5), (out, ref)

    # Ragged, multi-grid-step case (exercises the 2-step parallel grid + tail slice).
    N2 = 3000
    x2 = jax.random.normal(jax.random.PRNGKey(1), (N2, 2), dtype=jnp.float32)
    out2 = jax.block_until_ready(perceptron_forward(x2, w1, b1, w2, b2))
    ref2 = reference_forward(x2, w1, b1, w2, b2)
    assert out2.shape == (N2, 1), out2.shape
    assert jnp.allclose(out2, ref2, atol=1e-5, rtol=1e-5)

    print("KERNEL_OK")
</pallas_src>

<mosaic_0001>
module attributes {stable_mosaic.version = 11 : i64} {
  func.func @perceptron_kernel(%arg0: i32, %arg1: memref<13xf32, #tpu.memory_space<smem>>, %arg2: memref<2x8x128xf32, #tpu.memory_space<vmem>>, %arg3: memref<8x128xf32, #tpu.memory_space<vmem>>) attributes {dimension_semantics = [#tpu.dimension_semantics<parallel>], iteration_bounds = array<i64: 1>, scalar_prefetch = 0 : i64, scratch_operands = 0 : i64, tpu.core_type = #tpu.core_type<tc>, window_params = [{transform_indices = @transform_0, window_bounds = array<i64: 13>}, {transform_indices = @transform_1, window_bounds = array<i64: 2, 8, 128>}, {transform_indices = @transform_2, window_bounds = array<i64: 8, 128>}]} {
    %c0 = arith.constant 0 : index
    %0 = memref.load %arg1[%c0] : memref<13xf32, #tpu.memory_space<smem>>
    %c1 = arith.constant 1 : index
    %1 = memref.load %arg1[%c1] : memref<13xf32, #tpu.memory_space<smem>>
    %c2 = arith.constant 2 : index
    %2 = memref.load %arg1[%c2] : memref<13xf32, #tpu.memory_space<smem>>
    %c3 = arith.constant 3 : index
    %3 = memref.load %arg1[%c3] : memref<13xf32, #tpu.memory_space<smem>>
    %c4 = arith.constant 4 : index
    %4 = memref.load %arg1[%c4] : memref<13xf32, #tpu.memory_space<smem>>
    %c5 = arith.constant 5 : index
    %5 = memref.load %arg1[%c5] : memref<13xf32, #tpu.memory_space<smem>>
    %c6 = arith.constant 6 : index
    %6 = memref.load %arg1[%c6] : memref<13xf32, #tpu.memory_space<smem>>
    %c7 = arith.constant 7 : index
    %7 = memref.load %arg1[%c7] : memref<13xf32, #tpu.memory_space<smem>>
    %c8 = arith.constant 8 : index
    %8 = memref.load %arg1[%c8] : memref<13xf32, #tpu.memory_space<smem>>
    %c9 = arith.constant 9 : index
    %9 = memref.load %arg1[%c9] : memref<13xf32, #tpu.memory_space<smem>>
    %c10 = arith.constant 10 : index
    %10 = memref.load %arg1[%c10] : memref<13xf32, #tpu.memory_space<smem>>
    %c11 = arith.constant 11 : index
    %11 = memref.load %arg1[%c11] : memref<13xf32, #tpu.memory_space<smem>>
    %c12 = arith.constant 12 : index
    %12 = memref.load %arg1[%c12] : memref<13xf32, #tpu.memory_space<smem>>
    %c0_0 = arith.constant 0 : index
    %c0_1 = arith.constant 0 : index
    %c0_2 = arith.constant 0 : index
    %13 = vector.load %arg2[%c0_0, %c0_1, %c0_2] : memref<2x8x128xf32, #tpu.memory_space<vmem>>, vector<1x8x128xf32>
    %14 = vector.shape_cast %13 : vector<1x8x128xf32> to vector<8x128xf32>
    %c1_3 = arith.constant 1 : index
    %c0_4 = arith.constant 0 : index
    %c0_5 = arith.constant 0 : index
    %15 = vector.load %arg2[%c1_3, %c0_4, %c0_5] : memref<2x8x128xf32, #tpu.memory_space<vmem>>, vector<1x8x128xf32>
    %16 = vector.shape_cast %15 : vector<1x8x128xf32> to vector<8x128xf32>
    %17 = vector.broadcast %0 : f32 to vector<8x128xf32>
    %18 = arith.mulf %14, %17 : vector<8x128xf32>
    %19 = vector.broadcast %3 : f32 to vector<8x128xf32>
    %20 = arith.mulf %16, %19 : vector<8x128xf32>
    %21 = arith.addf %18, %20 : vector<8x128xf32>
    %22 = vector.broadcast %6 : f32 to vector<8x128xf32>
    %23 = arith.addf %21, %22 : vector<8x128xf32>
    %cst = arith.constant 0.000000e+00 : f32
    %24 = vector.broadcast %cst : f32 to vector<8x128xf32>
    %25 = arith.maximumf %23, %24 : vector<8x128xf32>
    %26 = vector.broadcast %1 : f32 to vector<8x128xf32>
    %27 = arith.mulf %14, %26 : vector<8x128xf32>
    %28 = vector.broadcast %4 : f32 to vector<8x128xf32>
    %29 = arith.mulf %16, %28 : vector<8x128xf32>
    %30 = arith.addf %27, %29 : vector<8x128xf32>
    %31 = vector.broadcast %7 : f32 to vector<8x128xf32>
    %32 = arith.addf %30, %31 : vector<8x128xf32>
    %cst_6 = arith.constant 0.000000e+00 : f32
    %33 = vector.broadcast %cst_6 : f32 to vector<8x128xf32>
    %34 = arith.maximumf %32, %33 : vector<8x128xf32>
    %35 = vector.broadcast %2 : f32 to vector<8x128xf32>
    %36 = arith.mulf %14, %35 : vector<8x128xf32>
    %37 = vector.broadcast %5 : f32 to vector<8x128xf32>
    %38 = arith.mulf %16, %37 : vector<8x128xf32>
    %39 = arith.addf %36, %38 : vector<8x128xf32>
    %40 = vector.broadcast %8 : f32 to vector<8x128xf32>
    %41 = arith.addf %39, %40 : vector<8x128xf32>
    %cst_7 = arith.constant 0.000000e+00 : f32
    %42 = vector.broadcast %cst_7 : f32 to vector<8x128xf32>
    %43 = arith.maximumf %41, %42 : vector<8x128xf32>
    %44 = vector.broadcast %9 : f32 to vector<8x128xf32>
    %45 = arith.mulf %25, %44 : vector<8x128xf32>
    %46 = vector.broadcast %10 : f32 to vector<8x128xf32>
    %47 = arith.mulf %34, %46 : vector<8x128xf32>
    %48 = arith.addf %45, %47 : vector<8x128xf32>
    %49 = vector.broadcast %11 : f32 to vector<8x128xf32>
    %50 = arith.mulf %43, %49 : vector<8x128xf32>
    %51 = arith.addf %48, %50 : vector<8x128xf32>
    %52 = vector.broadcast %12 : f32 to vector<8x128xf32>
    %53 = arith.addf %51, %52 : vector<8x128xf32>
    %c0_8 = arith.constant 0 : index
    %c0_9 = arith.constant 0 : index
    %54 = vector.load %arg3[%c0_8, %c0_9] : memref<8x128xf32, #tpu.memory_space<vmem>>, vector<8x128xf32>
    tpu.vector_store %arg3[%c0_8, %c0_9], %53 {strides = array<i32>} : memref<8x128xf32, #tpu.memory_space<vmem>>, vector<8x128xf32>,
    return
  }
  func.func @transform_0(%arg0: i32) -> i32 {
    %c0_i32 = arith.constant 0 : i32
    %c0_i32_0 = arith.constant 0 : i32
    return %c0_i32 : i32
  }
  func.func @transform_1(%arg0: i32) -> (i32, i32, i32) {
    %c0_i32 = arith.constant 0 : i32
    %c0_i32_0 = arith.constant 0 : i32
    %c0_i32_1 = arith.constant 0 : i32
    return %c0_i32, %arg0, %c0_i32_0 : i32, i32, i32
  }
  func.func @transform_2(%arg0: i32) -> (i32, i32) {
    %c0_i32 = arith.constant 0 : i32
    %c0_i32_0 = arith.constant 0 : i32
    return %arg0, %c0_i32 : i32, i32
  }
}

</mosaic_0001>

<bundles_post_ra>
// kernel: tpu_custom_call.1
= control target key start
LH: loop header
LB: loop body
LE: loop exit
PB: predicated region body
PF: predicated region fallthrough
CT: control target
= control target key end

     0   :  { %7 = vsyncpa [#allocation5], 0  ;;  %s246_s0 = inlined_call_operand.hbm [shape: f32[13], index: 0, kind: input, shape index: {}]   ;;  %s247_s1 = inlined_call_operand.hbm [shape: f32[2,8,128], index: 1, kind: input, shape index: {}]   ;;  %s248_s2 = inlined_call_operand.hbm [shape: f32[8,128], index: 2, kind: output, shape index: {}]  }
   0x1   :  { %8 = vsyncpa [#allocation3], 0 }
   0x2   :  { %9 = vsyncpa [#allocation4], 0  ;;  %s121_s11 = scalar_lea.hbm %s246_s0, 16 }
   0x3   :  { %p122_p0 = scmp.ne.s32.totalorder %s246_s0, %s121_s11  ;;  %p125_p1 = scmp.lt.u32.totalorder %s121_s11, %s246_s0 }
   0x5   :  { %p127_p2 = pnand %p125_p1, %p122_p0 }
   0x7   :  { %130 = shalt.err (!%p127_p2)
}
   0x8   :  { %s181_s16 = smov [#allocation2]   ;;  %s182_s19 = smov [#allocation6]  }
   0x9   :  { %17 = dma.hbm_to_smem %s246_s0, 16, %s181_s16, [#allocation5]  }
   0xa   :  { %s23_s20 = sshll.u32 %s182_s19, 4  ;;  %s131_s23 = scalar_lea.hbm %s247_s1, 256  ;;  %s24_s20 = int_to_ptr.vmem [resolvable:$true] %s23_s20 }
   0xb   :  { %p132_p3 = scmp.ne.s32.totalorder %s247_s1, %s131_s23  ;;  %p135_p4 = scmp.lt.u32.totalorder %s131_s23, %s247_s1 }
   0xd   :  { %p137_p5 = pnand %p135_p4, %p132_p3 }
   0xf   :  { %140 = shalt.err (!%p137_p5)
}
  0x10   :  { %s141_s28 = scalar_lea.vmem %s24_s20, 256  ;;  %p146_p7 = scmp.lt.s32.totalorder %s24_s20, %s24_s20 }
  0x11   :  { %p142_p6 = scmp.ne.s32.totalorder %s24_s20, %s141_s28  ;;  %p147_p8 = scmp.lt.s32.totalorder %s141_s28, %s141_s28 }
  0x13   :  { %p148_p9 = por %p147_p8, %p146_p7 }
  0x15   :  { %p149_p10 = pnand %p148_p9, %p142_p6 }
  0x17   :  { %152 = shalt.err (!%p149_p10)
}
  0x18   :  { %s183_s0 = smov 128   ;;  %s184_s29 = smov 8  }
  0x19   :  { %29 = dma.hbm_to_vmem [thread:$0]  %s247_s1, 256, %s24_s20, [#allocation3], %s183_s0, %s183_s0, %s184_s29  }
  0x1a   :  { %175 = dma.done.wait [#allocation5], 16  }
  0x1b   :  { %176 = vsyncadd [#allocation5], 4294967280 }
  0x1c   :  { %177 = dma.done.wait [#allocation3], 256  }
  0x1d   :  { %178 = vsyncadd [#allocation3], 4294967040 }
  0x1e   :  { %36 = sfence }
  0x1f   :  { %s37_s4 = sld [smem:[#allocation2]]  ;;  %s104_s5 = sld [smem:[#allocation2 + $0x1]]  ;;  %v50_v0 = vld [vmem:[#allocation6] sm:$0xff]  ;;  %v52_v1 = vld [vmem:[#allocation6 + $0x8] sm:$0xff] }
  0x20   :  { %s105_s6 = sld [smem:[#allocation2 + $0x2]]  ;;  %s106_s7 = sld [smem:[#allocation2 + $0x3]] }
  0x21   :  { %s107_s8 = sld [smem:[#allocation2 + $0x4]]  ;;  %s108_s9 = sld [smem:[#allocation2 + $0x5]] }
  0x22   :  { %s109_s10 = sld [smem:[#allocation2 + $0x6]]  ;;  %s110_s11 = sld [smem:[#allocation2 + $0x7]] }
  0x23   :  { %s111_s12 = sld [smem:[#allocation2 + $0x8]]  ;;  %s225_s13 = sld [smem:[#allocation2 + $0x9]] }
  0x24   :  { %s227_s14 = sld [smem:[#allocation2 + $0xa]]  ;;  %s229_s1 = sld [smem:[#allocation2 + $0xb]] }
  0x25   :  { %v53_v2 = vstv %s37_s4  ;;  %v61_v3 = vstv %s104_s5  ;;  %s115_s15 = sld [smem:[#allocation2 + $0xc]]  ;;  %s185_s16 = smov [#allocation7]  }
  0x26   :  { %v54_v4 = vmul.f32 %v53_v2, %v50_v0  ;;  %v55_v5 = vstv %s106_s7  ;;  %v62_v6 = vmul.f32 %v61_v3, %v50_v0  ;;  %v69_v7 = vstv %s105_s6  ;;  %s94_s17 = sshll.u32 %s185_s16, 4  ;;  %s95_s17 = int_to_ptr.vmem [resolvable:$true] %s94_s17 }
  0x27   :  { %v56_v8 = vmul.f32 %v55_v5, %v52_v1  ;;  %v63_v9 = vstv %s107_s8  ;;  %v70_v10 = vmul.f32 %v69_v7, %v50_v0  ;;  %v71_v11 = vstv %s108_s9  ;;  %s153_s18 = scalar_lea.vmem %s95_s17, 128  ;;  %p158_p12 = scmp.lt.s32.totalorder %s95_s17, %s95_s17 }
  0x28   :  { %v58_v12 = vstv %s109_s10  ;;  %v64_v13 = vmul.f32 %v63_v9, %v52_v1  ;;  %v72_v14 = vmul.f32 %v71_v11, %v52_v1  ;;  %v66_v16 = vstv %s110_s11  ;;  %p154_p11 = scmp.ne.s32.totalorder %s95_s17, %s153_s18  ;;  %p159_p13 = scmp.lt.s32.totalorder %s153_s18, %s153_s18 }
  0x29   :  { %v57_v15 = vadd.f32 %v56_v8, %v54_v4  ;;  %v74_v17 = vstv %s111_s12  ;;  %v77_v23 = vstv %s225_s13 }
  0x2a   :  { %v65_v18 = vadd.f32 %v64_v13, %v62_v6  ;;  %v73_v19 = vadd.f32 %v72_v14, %v70_v10  ;;  %v79_v25 = vstv %s227_s14  ;;  %v82_v26 = vstv %s229_s1  ;;  %p160_p0 = por %p159_p13, %p158_p12 }
  0x2b   :  { %v59_v20 = vadd.f32 %v58_v12, %v57_v15  ;;  %v85_v33 = vstv %s115_s15 }
  0x2c   :  { %v67_v21 = vadd.f32 %v66_v16, %v65_v18  ;;  %v75_v22 = vadd.f32 %v74_v17, %v73_v19  ;;  %p161_p1 = pnand %p160_p0, %p154_p11 }
  0x2d   :  { %v60_v24 = vmax.f32 %v59_v20, 0.0 }
  0x2e   :  { %v68_v27 = vmax.f32 %v67_v21, 0.0  ;;  %v76_v28 = vmax.f32 %v75_v22, 0.0 }
  0x2f   :  { %v78_v29 = vmul.f32 %v77_v23, %v60_v24 }
  0x30   :  { %v80_v30 = vmul.f32 %v79_v25, %v68_v27  ;;  %v83_v31 = vmul.f32 %v82_v26, %v76_v28 }
  0x32   :  { %v81_v32 = vadd.f32 %v80_v30, %v78_v29 }
  0x34   :  { %v84_v34 = vadd.f32 %v83_v31, %v81_v32 }
  0x36   :  { %v86_v35 = vadd.f32 %v85_v33, %v84_v34 }
  0x38   :  { %87 = vst [vmem:[#allocation7] sm:$0xff] %v86_v35 }
  0x39   :  { %164 = shalt.err (!%p161_p1)
}
  0x3a   :  { %s165_s21 = scalar_lea.hbm %s248_s2, 128 }
  0x3b   :  { %p166_p2 = scmp.ne.s32.totalorder %s248_s2, %s165_s21  ;;  %p169_p3 = scmp.lt.u32.totalorder %s165_s21, %s248_s2 }
  0x3d   :  { %p171_p4 = pnand %p169_p3, %p166_p2 }
  0x3f   :  { %174 = shalt.err (!%p171_p4)
}
  0x40   :  { %97 = dma.vmem_to_hbm [thread:$0]  %s95_s17, 128, %s248_s2, [#allocation4]  }
  0x41   :  { %179 = dma.done.wait [#allocation4], 128  }
  0x42   :  { %180 = vsyncadd [#allocation4], 4294967168 }
  0x43   :  { %101 = vsyncpa [#allocation3], 1 }
  0x44   :  { %102 = vsyncpa [#allocation4], 1 }
  0x45   :  { %103 = vsyncpa [#allocation5], 1 }

</bundles_post_ra>
